<compile_context>
chip_gen: v7x
topology: tpu7x:2x2x1
jax: 0.10.0
libtpu: 0.0.40
codegen_flags: <defaults>
</compile_context>

<pallas_src>
import functools

import jax
import jax.numpy as jnp
from jax.experimental import pallas as pl
from jax.experimental.pallas import tpu as pltpu

LANE = 128
_VMEM_LIMIT = None


def _round_up(v, m):
    return (v + m - 1) // m * m


def _vmem_limit_bytes():
    """~80% of physical VMEM (51 MiB v7x, 102 MiB v5e/v6e); safe fallback 48 MiB."""
    global _VMEM_LIMIT
    if _VMEM_LIMIT is None:
        try:
            cap = int(pltpu.get_tpu_info().vmem_capacity_bytes)
            _VMEM_LIMIT = int(cap * 0.8)
        except Exception:
            _VMEM_LIMIT = 48 * 1024 * 1024
    return _VMEM_LIMIT


# ----------------------------- Pallas kernel ------------------------------ #
def cheb_k2_kernel(lhat_ref, xw1_ref, xw0_ref, o_ref, acc_ref):
    """One (row-tile, contraction-tile) step of out = L_hat @ (x W_1) + (x W_0 + b).

    lhat_ref : [TILE_M, TILE_K]      bf16  block of the scaled Laplacian
    xw1_ref  : [TILE_K, F_OUT_PAD]   bf16  (x @ W_1), lane-padded to 128
    xw0_ref  : [TILE_M, F_OUT_PAD]   f32   (x @ W_0 + bias), this slab's rows
    o_ref    : [TILE_M, F_OUT_PAD]   bf16  lane-dense output slab
    acc_ref  : [TILE_M, F_OUT_PAD]   f32   accumulator scratch
    """
    k = pl.program_id(1)

    @pl.when(k == 0)
    def _init():
        acc_ref[...] = xw0_ref[...]

    acc_ref[...] += jnp.dot(lhat_ref[...], xw1_ref[...],
                            preferred_element_type=jnp.float32)

    @pl.when(k == pl.num_programs(1) - 1)
    def _finalize():
        o_ref[...] = acc_ref[...].astype(o_ref.dtype)


def _pick_tiles(n, f_out_pad, tile_n, tile_k_override, vmem_limit):
    # Row tile: multiple of 16 (bf16 sublane packing), aim for >= 2 row tiles so
    # the "parallel" axis splits across both TensorCores on v7x.
    tile_m = min(int(tile_n), max(16, _round_up(pl.cdiv(n, 2), 16)))
    tile_m = min(tile_m, _round_up(n, 16))

    if tile_k_override is not None:
        tile_k = int(tile_k_override)
        if tile_k >= n:
            tile_k = n
        return tile_m, tile_k

    # Lane/sublane-padding-aware VMEM accounting:
    #   fixed  : xw0 (2 bufs, f32) + out (2 bufs, bf16) + acc (f32)
    #   per-k  : lhat (2 bufs, bf16 row = tile_m*2B) + xw1 (2 bufs, bf16 128-lane row)
    fixed = tile_m * f_out_pad * (2 * 4 + 2 * 2 + 4)
    per_k = 2 * tile_m * 2 + 2 * f_out_pad * 2
    budget = max(0, vmem_limit - fixed - (4 << 20))       # 4 MiB slack
    tile_k = budget // per_k
    if tile_k >= n:
        return tile_m, n                                   # single contraction step
    tile_k = max(LANE, (tile_k // LANE) * LANE)            # lane-aligned lhat blocks
    return tile_m, tile_k


def cheb_conv_pallas(lhat, x, weight, bias, *, tile_n=512, tile_k=None):
    """ChebConv (K=2) forward: out = x @ W_0 + (L_hat @ x) @ W_1 + bias.

    lhat:   [N, N]            (cast to bf16 here if not already)
    x:      [N, F_in]
    weight: [K, F_in, F_out]
    bias:   [F_out]
    """
    N, F_in = x.shape
    K, _, F_out = weight.shape
    if K != 2:
        # TODO(synk): K>2 needs the full Chebyshev recursion (Tx_k matrices) —
        # multiple passes over lhat; only the Cheb1 default K=2 is fused here.
        raise NotImplementedError("cheb_conv_pallas implements K=2 (Cheb1 default)")

    f_out_pad = _round_up(F_out, LANE)
    vmem_limit = _vmem_limit_bytes()
    tile_m, tk = _pick_tiles(N, f_out_pad, tile_n, tile_k, vmem_limit)

    # Reassociated small GEMMs (O(N*F_in*F_out), fused by XLA under jit).
    xf = x.astype(jnp.float32)
    xw0 = jnp.zeros((N, f_out_pad), jnp.float32).at[:, :F_out].set(
        xf @ weight[0].astype(jnp.float32) + bias.astype(jnp.float32)[None, :])
    xw1_small = xf @ weight[1].astype(jnp.float32)

    # Contraction-axis padding (only when K-tiling kicks in for very large N).
    if tk < N:
        n_pad = _round_up(N, tk)
    else:
        tk = N
        n_pad = N
    k_steps = n_pad // tk

    xw1 = jnp.zeros((n_pad, f_out_pad), jnp.bfloat16).at[:N, :F_out].set(
        xw1_small.astype(jnp.bfloat16))
    lhat_b = lhat.astype(jnp.bfloat16)
    if n_pad > N:
        lhat_b = jnp.pad(lhat_b, ((0, 0), (0, n_pad - N)))

    grid = (pl.cdiv(N, tile_m), k_steps)

    cost = pl.CostEstimate(
        flops=2 * N * n_pad * f_out_pad,
        transcendentals=0,
        bytes_accessed=(N * n_pad * 2            # lhat (bf16) — dominant stream
                        + n_pad * f_out_pad * 2  # xw1 (bf16)
                        + N * f_out_pad * 4      # xw0 (f32)
                        + N * f_out_pad * 2),    # out (bf16)
    )

    out_padded = pl.pallas_call(
        cheb_k2_kernel,
        out_shape=jax.ShapeDtypeStruct((N, f_out_pad), jnp.bfloat16),
        grid=grid,
        in_specs=[
            pl.BlockSpec((tile_m, tk), lambda i, k: (i, k)),          # lhat block
            pl.BlockSpec((tk, f_out_pad), lambda i, k: (k, 0)),       # x @ W1 (bf16)
            pl.BlockSpec((tile_m, f_out_pad), lambda i, k: (i, 0)),   # x @ W0 + b
        ],
        out_specs=pl.BlockSpec((tile_m, f_out_pad), lambda i, k: (i, 0)),
        scratch_shapes=[pltpu.VMEM((tile_m, f_out_pad), jnp.float32)],
        compiler_params=pltpu.CompilerParams(
            dimension_semantics=("parallel", "arbitrary"),
            vmem_limit_bytes=vmem_limit,
        ),
        cost_estimate=cost,
    )(lhat_b, xw1, xw0)

    return out_padded[:, :F_out].astype(jnp.float32)


# ------------------------------ JAX glue ---------------------------------- #
def scaled_laplacian_dense(edge_index, edge_weight, num_nodes, lambda_max=2.0,
                           dtype=jnp.float32):
    """Dense L_hat = 2(I - D^-1/2 A D^-1/2)/lambda_max - I.

    Matches torch_geometric ChebConv.__norm__ with normalization='sym' and the
    default lambda_max=2.0 for undirected/symmetric edge sets.
    Computed in f32; the final cast (e.g. to bf16) fuses into the producer under jit.
    """
    src, dst = edge_index[0], edge_index[1]
    A = jnp.zeros((num_nodes, num_nodes), jnp.float32)
    A = A.at[dst, src].add(edge_weight.astype(jnp.float32))
    deg = jnp.sum(A, axis=1)
    dinv = jnp.where(deg > 0, 1.0 / jnp.sqrt(deg), 0.0)
    a_norm = dinv[:, None] * A * dinv[None, :]
    eye = jnp.eye(num_nodes, dtype=jnp.float32)
    lhat = (2.0 / lambda_max) * (eye - a_norm) - eye
    return lhat.astype(dtype)


@functools.partial(jax.jit, static_argnames=("tile_n", "tile_k"))
def _cheb1_forward(x, edge_index, edge_weight, weight, bias, *, tile_n=512,
                   tile_k=None):
    n = x.shape[0]
    lhat = scaled_laplacian_dense(edge_index, edge_weight, n, dtype=jnp.bfloat16)
    return cheb_conv_pallas(lhat, x, weight, bias, tile_n=tile_n, tile_k=tile_k)


class Cheb1Pallas:
    """Mirrors Cheb1(in_channels, out_channels, K=2)."""

    def __init__(self, in_channels, out_channels, K=2, key=jax.random.PRNGKey(0)):
        self.K = K
        k_w, k_b = jax.random.split(key)
        limit = (6.0 / (in_channels + out_channels)) ** 0.5   # glorot-uniform
        self.weight = jax.random.uniform(
            k_w, (K, in_channels, out_channels), jnp.float32, -limit, limit)
        # PyG default init is zeros; use small random values so the bias path is tested.
        self.bias = 0.1 * jax.random.normal(k_b, (out_channels,), jnp.float32)

    def __call__(self, x, edge_index, edge_weight=None, *, tile_n=512, tile_k=None):
        if edge_weight is None:
            edge_weight = jnp.ones((edge_index.shape[1],), jnp.float32)
        return _cheb1_forward(x.astype(jnp.float32), edge_index, edge_weight,
                              self.weight, self.bias, tile_n=tile_n, tile_k=tile_k)


# ------------------------- pure-JAX reference ------------------------------ #
def cheb_reference(lhat, x, weight, bias):
    K = weight.shape[0]
    tx_prev = x
    out = x @ weight[0]
    if K > 1:
        tx_cur = lhat @ x
        out = out + tx_cur @ weight[1]
        for k in range(2, K):
            tx_new = 2.0 * (lhat @ tx_cur) - tx_prev
            out = out + tx_new @ weight[k]
            tx_prev, tx_cur = tx_cur, tx_new
    return out + bias[None, :]


def ring_graph(N, key):
    """Undirected weighted ring graph: edge_index [2, 2N], symmetric weights."""
    idx = jnp.arange(N, dtype=jnp.int32)
    src = jnp.concatenate([idx, (idx + 1) % N])
    dst = jnp.concatenate([(idx + 1) % N, idx])
    edge_index = jnp.stack([src, dst], axis=0)
    w = jax.random.uniform(key, (N,), jnp.float32, 0.5, 1.5)
    edge_weight = jnp.concatenate([w, w])       # symmetric
    return edge_index, edge_weight


# --------------------------------- main ------------------------------------ #
if __name__ == "__main__":
    key = jax.random.PRNGKey(0)
    k_x1, k_w, k_e1, k_x2, k_e2, k_x3, k_e3 = jax.random.split(key, 7)

    F_in, F_out, K = 4, 8, 2
    model = Cheb1Pallas(F_in, F_out, K=K, key=k_w)

    def check(out, x, ei, ew, n):
        ref = cheb_reference(scaled_laplacian_dense(ei, ew, n), x,
                             model.weight, model.bias)
        assert out.shape == (n, F_out)
        assert jnp.allclose(out, ref, atol=6e-2, rtol=6e-2), (
            float(jnp.max(jnp.abs(out - ref))))

    # --- Test 1: small graph, single grid step ---
    N1 = 16
    x1 = jax.random.normal(k_x1, (N1, F_in), jnp.float32)
    ei1, ew1 = ring_graph(N1, k_e1)
    out1 = jax.block_until_ready(model(x1, ei1, ew1))
    check(out1, x1, ei1, ew1, N1)

    # --- Test 2: larger graph, 2 row tiles (megacore split path) ---
    N2 = 256
    x2 = jax.random.normal(k_x2, (N2, F_in), jnp.float32)
    ei2, ew2 = ring_graph(N2, k_e2)
    out2 = jax.block_until_ready(model(x2, ei2, ew2))
    check(out2, x2, ei2, ew2, N2)

    # --- Test 3: forced contraction tiling + padding (accumulator path) ---
    N3 = 320
    x3 = jax.random.normal(k_x3, (N3, F_in), jnp.float32)
    ei3, ew3 = ring_graph(N3, k_e3)
    out3 = jax.block_until_ready(model(x3, ei3, ew3, tile_n=128, tile_k=128))
    check(out3, x3, ei3, ew3, N3)

    print("KERNEL_OK")
</pallas_src>

<mosaic_0001>
module attributes {stable_mosaic.version = 11 : i64} {
  func.func private @main(%arg0: i32) attributes {dimension_semantics = [#tpu.dimension_semantics<core_parallel>], iteration_bounds = array<i64: 2>, tpu.core_type = #tpu.core_type<sc_scalar_subcore>, window_params = []} {
    return
  }
}

module attributes {stable_mosaic.version = 11 : i64} {
  func.func private @main(%arg0: i32) attributes {dimension_semantics = [#tpu.dimension_semantics<core_parallel>], iteration_bounds = array<i64: 2>, tpu.core_type = #tpu.core_type<sc_scalar_subcore>, window_params = []} {
    return
  }
}

module attributes {stable_mosaic.version = 11 : i64} {
  func.func @cheb_k2_kernel(%arg0: i32, %arg1: i32, %arg2: memref<16x16xbf16, #tpu.memory_space<vmem>>, %arg3: memref<16x128xbf16, #tpu.memory_space<vmem>>, %arg4: memref<16x128xf32, #tpu.memory_space<vmem>>, %arg5: memref<16x128xbf16, #tpu.memory_space<vmem>>, %arg6: memref<16x128xf32, #tpu.memory_space<vmem>>) attributes {dimension_semantics = [#tpu.dimension_semantics<parallel>, #tpu.dimension_semantics<arbitrary>], iteration_bounds = array<i64: 1, 1>, scalar_prefetch = 0 : i64, scratch_operands = 1 : i64, tpu.core_type = #tpu.core_type<tc>, window_params = [{transform_indices = @transform_0, window_bounds = array<i64: 16, 16>}, {transform_indices = @transform_1, window_bounds = array<i64: 16, 128>}, {transform_indices = @transform_2, window_bounds = array<i64: 16, 128>}, {transform_indices = @transform_3, window_bounds = array<i64: 16, 128>}]} {
    %c0_i32 = arith.constant 0 : i32
    %0 = arith.cmpi eq, %arg1, %c0_i32 : i32
    %1 = arith.extui %0 : i1 to i32
    %c0_i32_0 = arith.constant 0 : i32
    %2 = arith.cmpi ne, %1, %c0_i32_0 : i32
    scf.if %2 {
      %c0_10 = arith.constant 0 : index
      %c0_11 = arith.constant 0 : index
      %12 = vector.load %arg4[%c0_10, %c0_11] : memref<16x128xf32, #tpu.memory_space<vmem>>, vector<16x128xf32>
      %c0_12 = arith.constant 0 : index
      %c0_13 = arith.constant 0 : index
      %13 = vector.load %arg6[%c0_12, %c0_13] : memref<16x128xf32, #tpu.memory_space<vmem>>, vector<16x128xf32>
      tpu.vector_store %arg6[%c0_12, %c0_13], %12 {strides = array<i32>} : memref<16x128xf32, #tpu.memory_space<vmem>>, vector<16x128xf32>,
    } else {
    }
    %c0 = arith.constant 0 : index
    %c0_1 = arith.constant 0 : index
    %3 = vector.load %arg6[%c0, %c0_1] : memref<16x128xf32, #tpu.memory_space<vmem>>, vector<16x128xf32>
    %c0_2 = arith.constant 0 : index
    %c0_3 = arith.constant 0 : index
    %4 = vector.load %arg2[%c0_2, %c0_3] : memref<16x16xbf16, #tpu.memory_space<vmem>>, vector<16x16xbf16>
    %c0_4 = arith.constant 0 : index
    %c0_5 = arith.constant 0 : index
    %5 = vector.load %arg3[%c0_4, %c0_5] : memref<16x128xbf16, #tpu.memory_space<vmem>>, vector<16x128xbf16>
    %cst = arith.constant dense<0.000000e+00> : vector<16x128xf32>
    %6 = tpu.matmul %4, %5, %cst {dimension_numbers = #tpu.dot_dimension_numbers<[1], [0], [0], [1], [0, 0, 1, 1], [], []>} : vector<16x16xbf16>, vector<16x128xbf16>, vector<16x128xf32> -> vector<16x128xf32>
    %7 = arith.addf %3, %6 : vector<16x128xf32>
    %c0_6 = arith.constant 0 : index
    %c0_7 = arith.constant 0 : index
    %8 = vector.load %arg6[%c0_6, %c0_7] : memref<16x128xf32, #tpu.memory_space<vmem>>, vector<16x128xf32>
    tpu.vector_store %arg6[%c0_6, %c0_7], %7 {strides = array<i32>} : memref<16x128xf32, #tpu.memory_space<vmem>>, vector<16x128xf32>,
    %c0_i32_8 = arith.constant 0 : i32
    %9 = arith.cmpi eq, %arg1, %c0_i32_8 : i32
    %10 = arith.extui %9 : i1 to i32
    %c0_i32_9 = arith.constant 0 : i32
    %11 = arith.cmpi ne, %10, %c0_i32_9 : i32
    scf.if %11 {
      %c0_10 = arith.constant 0 : index
      %c0_11 = arith.constant 0 : index
      %12 = vector.load %arg6[%c0_10, %c0_11] : memref<16x128xf32, #tpu.memory_space<vmem>>, vector<16x128xf32>
      %13 = arith.truncf %12 : vector<16x128xf32> to vector<16x128xbf16>
      %c0_12 = arith.constant 0 : index
      %c0_13 = arith.constant 0 : index
      %14 = vector.load %arg5[%c0_12, %c0_13] : memref<16x128xbf16, #tpu.memory_space<vmem>>, vector<16x128xbf16>
      tpu.vector_store %arg5[%c0_12, %c0_13], %13 {strides = array<i32>} : memref<16x128xbf16, #tpu.memory_space<vmem>>, vector<16x128xbf16>,
    } else {
    }
    return
  }
  func.func @transform_0(%arg0: i32, %arg1: i32) -> (i32, i32) {
    %c0_i32 = arith.constant 0 : i32
    return %arg0, %arg1 : i32, i32
  }
  func.func @transform_1(%arg0: i32, %arg1: i32) -> (i32, i32) {
    %c0_i32 = arith.constant 0 : i32
    %c0_i32_0 = arith.constant 0 : i32
    return %arg1, %c0_i32 : i32, i32
  }
  func.func @transform_2(%arg0: i32, %arg1: i32) -> (i32, i32) {
    %c0_i32 = arith.constant 0 : i32
    %c0_i32_0 = arith.constant 0 : i32
    return %arg0, %c0_i32 : i32, i32
  }
  func.func @transform_3(%arg0: i32, %arg1: i32) -> (i32, i32) {
    %c0_i32 = arith.constant 0 : i32
    %c0_i32_0 = arith.constant 0 : i32
    return %arg0, %c0_i32 : i32, i32
  }
}

</mosaic_0001>

<bundles_post_ra>
// kernel: _cheb1_forward.1
= control target key start
LH: loop header
LB: loop body
LE: loop exit
PB: predicated region body
PF: predicated region fallthrough
CT: control target
= control target key end

     0   :  { %v132_v0 = vmov 0.0   ;;  %vm133_vm0 = vmmov 0   ;;  %vm40_vm1 = vcmask 130048   ;;  %s169_s1 = inlined_call_operand.vmem [shape: bf16[16,128], index: 1, kind: input, shape index: {}]   ;;  %s170_s0 = inlined_call_operand.vmem [shape: bf16[16,16], index: 0, kind: input, shape index: {}]   ;;  %s171_s2 = inlined_call_operand.vmem [shape: f32[16,128], index: 2, kind: input, shape index: {}]   ;;  %s172_s3 = inlined_call_operand.vmem [shape: bf16[16,128], index: 3, kind: output, shape index: {}]  }
   0x1   :  { %122 = vmatprep.subr.bf16.mxu0 %v132_v0  ;;  %v130_v1 = vld [vmem:[%s169_s1] sm:$0xff]   ;;  %124 = vmatprep.mubr.msk.bf16.mxu0 %vm133_vm0, %v132_v0  ;;  %v20_v5 = vld [vmem:[%s171_s2 + $0x8] sm:$0xff] }
   0x2   :  { %v131_v2 = vld [vmem:[%s170_s0] sm:$0xff]   ;;  %123 = vmatpush3.bf16.msra.mxu0 %v130_v1 }
   0x3   :  { %v19_v3 = vld [vmem:[%s171_s2] sm:$0xff] }
   0x5   :  { %125 = vmatmul.mubr.msk.bf16.vlgmr.msra.gmra.mrb[0].mxu0 %vm40_vm1, %v131_v2 }
  0xd8   :  { %v78_v4 = vpop.f32.mrb[0].mxu0 }
  0xd9   :  { %v126_v6 = vpop.f32.mrb[1].mxu0  ;;  %v85_v8 = vadd.f32 %v78_v4, %v19_v3 }
  0xda   :  { %v81_v7 = vpop.f32.mrb[2].mxu0 }
  0xdb   :  { %v86_v9 = vadd.f32 %v81_v7, %v20_v5  ;;  %v127_v10 = vpop.f32.mrb[3].mxu0 }
  0xdd   :  { %v118_v11 = vpack.c.bf16 %v86_v9, %v85_v8 }
  0xdf   :  { %119 = vst [vmem:[%s172_s3] sm:$0xff] %v118_v11  }

</bundles_post_ra>
